<compile_context>
chip_gen: v7x
topology: tpu7x:2x2x1
jax: 0.10.0
libtpu: 0.0.40
codegen_flags: <defaults>
</compile_context>

<pallas_src>
import jax
import jax.numpy as jnp
from jax.experimental import pallas as pl
from jax.experimental.pallas import tpu as pltpu


def _round_up(x, m):
    return (x + m - 1) // m * m


def planar_kernel(p_ref, z_ref, fz_ref, ld_ref):
    """p_ref (SMEM, scalar-prefetch): [b, w.u_hat, w_0..w_{D-1}, uhat_0..uhat_{D-1}]
    z_ref:  (D, block_b) VMEM    -- z transposed, batch on lanes
    fz_ref: (D, block_b) VMEM    -- f(z) transposed
    ld_ref: (1, block_b) VMEM    -- log|det| per sample
    """
    D = z_ref.shape[0]
    b = p_ref[0]
    wtuh = p_ref[1]

    # a = z @ w^T + b, computed as an elementwise sum over the D sublane rows.
    a = z_ref[0:1, :] * p_ref[2] + b
    for d in range(1, D):
        a = a + z_ref[d:d + 1, :] * p_ref[2 + d]

    t = jnp.tanh(a)                                   # (1, block_b)

    # f(z) = z + u_hat * tanh(a)   (u_hat broadcast over the batch lanes)
    for d in range(D):
        fz_ref[d:d + 1, :] = z_ref[d:d + 1, :] + p_ref[2 + D + d] * t

    # det = 1 + psi @ u_hat^T  with psi = (1 - tanh(a)^2) w
    #     = 1 + (1 - tanh(a)^2) * (w . u_hat)
    det = 1.0 + (1.0 - t * t) * wtuh
    ld_ref[...] = jnp.log(jnp.abs(det) + 1e-6)


def planar_transform_forward(x, u, w, b, normalize_u=True):
    """x: z of shape (B, D) or a tuple (z, sum_log_abs_det_jacobians).
    u, w: (1, D); b: (1,).  Returns (f_z, sum_log_abs_det_jacobians)."""
    if isinstance(x, tuple):
        z, sum_ladj = x
    else:
        z, sum_ladj = x, 0.0

    z = z.astype(jnp.float32)
    B, D = z.shape

    # ---- parameter-only math, folded into the wrapper (scalar work) ----
    u_hat = u
    if normalize_u:
        wtu = jnp.sum(w * u)
        m_wtu = -1.0 + jnp.log1p(jnp.exp(wtu))
        u_hat = u + (m_wtu - wtu) * w / jnp.sum(w * w)
    params = jnp.concatenate([
        b.reshape(-1)[:1],
        jnp.sum(w * u_hat).reshape(1),
        w.reshape(-1),
        u_hat.reshape(-1),
    ]).astype(jnp.float32)                            # (2 + 2*D,)

    # ---- lane-dense layout: (D, B_pad), batch on the 128-lane axis ----
    block_b = 2048 if B >= 2048 else _round_up(B, 128)
    B_pad = _round_up(B, block_b)
    n_blocks = B_pad // block_b

    zT = jnp.transpose(z, (1, 0))                     # (D, B)
    if B_pad != B:
        zT = jnp.pad(zT, ((0, 0), (0, B_pad - B)))

    cost = pl.CostEstimate(
        flops=12 * D * B_pad,
        transcendentals=2 * B_pad,                    # tanh + log per sample
        bytes_accessed=4 * (2 * D * B_pad + B_pad + params.shape[0]),
    )

    fzT, ld = pl.pallas_call(
        planar_kernel,
        out_shape=(jax.ShapeDtypeStruct((D, B_pad), jnp.float32),
                   jax.ShapeDtypeStruct((1, B_pad), jnp.float32)),
        grid_spec=pltpu.PrefetchScalarGridSpec(
            num_scalar_prefetch=1,
            grid=(n_blocks,),
            in_specs=[pl.BlockSpec((D, block_b), lambda i, p: (0, i))],
            out_specs=(pl.BlockSpec((D, block_b), lambda i, p: (0, i)),
                       pl.BlockSpec((1, block_b), lambda i, p: (0, i))),
        ),
        compiler_params=pltpu.CompilerParams(
            dimension_semantics=("parallel",)),
        cost_estimate=cost,
    )(params, zT)

    f_z = jnp.transpose(fzT[:, :B], (1, 0))           # back to (B, D)
    log_abs_det_jacobian = ld[0, :B]
    return f_z, sum_ladj + log_abs_det_jacobian


def reference_forward(z, u, w, b, normalize_u=True):
    """Pure-JAX reference reproducing the PyTorch forward (for validation)."""
    u_hat = u
    if normalize_u:
        wtu = (w @ u.T).squeeze()
        m_wtu = -1.0 + jnp.log1p(jnp.exp(wtu))
        u_hat = u + (m_wtu - wtu) * w / (w @ w.T)
    a = z @ w.T + b                                   # (B, 1)
    f_z = z + u_hat * jnp.tanh(a)
    psi = (1.0 - jnp.tanh(a) ** 2) @ w                # (B, D)
    det = 1.0 + psi @ u_hat.T                         # (B, 1)
    log_abs_det_jacobian = jnp.log(jnp.abs(det) + 1e-6).squeeze()
    return f_z, 0.0 + log_abs_det_jacobian


if __name__ == "__main__":
    B, D = 128, 2                                     # z: (batch, 2)
    init_sigma = 0.01

    key = jax.random.PRNGKey(0)
    kz, ku, kw = jax.random.split(key, 3)
    z = jax.random.normal(kz, (B, D), jnp.float32)
    u = jax.random.normal(ku, (1, D), jnp.float32) * init_sigma   # self.u
    w = jax.random.normal(kw, (1, D), jnp.float32) * init_sigma   # self.w
    b = jnp.zeros((1,), jnp.float32)                               # self.b

    fwd = jax.jit(planar_transform_forward)
    f_z, sladj = jax.block_until_ready(fwd(z, u, w, b))

    f_ref, sladj_ref = reference_forward(z, u, w, b)
    assert f_z.shape == (B, D) and sladj.shape == (B,)
    assert bool(jnp.allclose(f_z, f_ref, atol=1e-5, rtol=1e-5)), "f_z mismatch"
    assert bool(jnp.allclose(sladj, sladj_ref, atol=1e-5, rtol=1e-5)), "logdet mismatch"
    print("KERNEL_OK")
</pallas_src>

<mosaic_0001>
module attributes {stable_mosaic.version = 11 : i64} {
  func.func @planar_kernel(%arg0: i32, %arg1: memref<6xf32, #tpu.memory_space<smem>>, %arg2: memref<2x128xf32, #tpu.memory_space<vmem>>, %arg3: memref<2x128xf32, #tpu.memory_space<vmem>>, %arg4: memref<1x128xf32, #tpu.memory_space<vmem>>) attributes {dimension_semantics = [#tpu.dimension_semantics<parallel>], iteration_bounds = array<i64: 1>, scalar_prefetch = 1 : i64, scratch_operands = 0 : i64, tpu.core_type = #tpu.core_type<tc>, window_params = [{transform_indices = @transform_0, window_bounds = array<i64: 2, 128>}, {transform_indices = @transform_1, window_bounds = array<i64: 2, 128>}, {transform_indices = @transform_2, window_bounds = array<i64: 1, 128>}]} {
    %c0 = arith.constant 0 : index
    %0 = memref.load %arg1[%c0] : memref<6xf32, #tpu.memory_space<smem>>
    %c1 = arith.constant 1 : index
    %1 = memref.load %arg1[%c1] : memref<6xf32, #tpu.memory_space<smem>>
    %c0_0 = arith.constant 0 : index
    %c0_1 = arith.constant 0 : index
    %2 = vector.load %arg2[%c0_0, %c0_1] : memref<2x128xf32, #tpu.memory_space<vmem>>, vector<1x128xf32>
    %c2 = arith.constant 2 : index
    %3 = memref.load %arg1[%c2] : memref<6xf32, #tpu.memory_space<smem>>
    %4 = vector.broadcast %3 : f32 to vector<1x128xf32>
    %5 = arith.mulf %2, %4 : vector<1x128xf32>
    %6 = vector.broadcast %0 : f32 to vector<1x128xf32>
    %7 = arith.addf %5, %6 : vector<1x128xf32>
    %c1_2 = arith.constant 1 : index
    %c0_3 = arith.constant 0 : index
    %8 = vector.load %arg2[%c1_2, %c0_3] : memref<2x128xf32, #tpu.memory_space<vmem>>, vector<1x128xf32>
    %c3 = arith.constant 3 : index
    %9 = memref.load %arg1[%c3] : memref<6xf32, #tpu.memory_space<smem>>
    %10 = vector.broadcast %9 : f32 to vector<1x128xf32>
    %11 = arith.mulf %8, %10 : vector<1x128xf32>
    %12 = arith.addf %7, %11 : vector<1x128xf32>
    %13 = math.tanh %12 : vector<1x128xf32>
    %c0_4 = arith.constant 0 : index
    %c0_5 = arith.constant 0 : index
    %14 = vector.load %arg2[%c0_4, %c0_5] : memref<2x128xf32, #tpu.memory_space<vmem>>, vector<1x128xf32>
    %c4 = arith.constant 4 : index
    %15 = memref.load %arg1[%c4] : memref<6xf32, #tpu.memory_space<smem>>
    %16 = vector.broadcast %15 : f32 to vector<1x128xf32>
    %17 = arith.mulf %16, %13 : vector<1x128xf32>
    %18 = arith.addf %14, %17 : vector<1x128xf32>
    %c0_6 = arith.constant 0 : index
    %c0_7 = arith.constant 0 : index
    %19 = vector.load %arg3[%c0_6, %c0_7] : memref<2x128xf32, #tpu.memory_space<vmem>>, vector<1x128xf32>
    tpu.vector_store %arg3[%c0_6, %c0_7], %18 {strides = array<i32>} : memref<2x128xf32, #tpu.memory_space<vmem>>, vector<1x128xf32>,
    %c1_8 = arith.constant 1 : index
    %c0_9 = arith.constant 0 : index
    %20 = vector.load %arg2[%c1_8, %c0_9] : memref<2x128xf32, #tpu.memory_space<vmem>>, vector<1x128xf32>
    %c5 = arith.constant 5 : index
    %21 = memref.load %arg1[%c5] : memref<6xf32, #tpu.memory_space<smem>>
    %22 = vector.broadcast %21 : f32 to vector<1x128xf32>
    %23 = arith.mulf %22, %13 : vector<1x128xf32>
    %24 = arith.addf %20, %23 : vector<1x128xf32>
    %c1_10 = arith.constant 1 : index
    %c0_11 = arith.constant 0 : index
    %25 = vector.load %arg3[%c1_10, %c0_11] : memref<2x128xf32, #tpu.memory_space<vmem>>, vector<1x128xf32>
    tpu.vector_store %arg3[%c1_10, %c0_11], %24 {strides = array<i32>} : memref<2x128xf32, #tpu.memory_space<vmem>>, vector<1x128xf32>,
    %26 = arith.mulf %13, %13 : vector<1x128xf32>
    %cst = arith.constant 1.000000e+00 : f32
    %27 = vector.broadcast %cst : f32 to vector<1x128xf32>
    %28 = arith.subf %27, %26 : vector<1x128xf32>
    %29 = vector.broadcast %1 : f32 to vector<1x128xf32>
    %30 = arith.mulf %28, %29 : vector<1x128xf32>
    %cst_12 = arith.constant 1.000000e+00 : f32
    %31 = vector.broadcast %cst_12 : f32 to vector<1x128xf32>
    %32 = arith.addf %31, %30 : vector<1x128xf32>
    %33 = math.absf %32 : vector<1x128xf32>
    %cst_13 = arith.constant 9.99999997E-7 : f32
    %34 = vector.broadcast %cst_13 : f32 to vector<1x128xf32>
    %35 = arith.addf %33, %34 : vector<1x128xf32>
    %36 = math.log %35 : vector<1x128xf32>
    %c0_14 = arith.constant 0 : index
    %c0_15 = arith.constant 0 : index
    %37 = vector.load %arg4[%c0_14, %c0_15] : memref<1x128xf32, #tpu.memory_space<vmem>>, vector<1x128xf32>
    tpu.vector_store %arg4[%c0_14, %c0_15], %36 {strides = array<i32>} : memref<1x128xf32, #tpu.memory_space<vmem>>, vector<1x128xf32>,
    return
  }
  func.func @transform_0(%arg0: i32, %arg1: memref<6xf32, #tpu.memory_space<smem>>) -> (i32, i32) {
    %c0_i32 = arith.constant 0 : i32
    %c0_i32_0 = arith.constant 0 : i32
    return %c0_i32, %arg0 : i32, i32
  }
  func.func @transform_1(%arg0: i32, %arg1: memref<6xf32, #tpu.memory_space<smem>>) -> (i32, i32) {
    %c0_i32 = arith.constant 0 : i32
    %c0_i32_0 = arith.constant 0 : i32
    return %c0_i32, %arg0 : i32, i32
  }
  func.func @transform_2(%arg0: i32, %arg1: memref<6xf32, #tpu.memory_space<smem>>) -> (i32, i32) {
    %c0_i32 = arith.constant 0 : i32
    %c0_i32_0 = arith.constant 0 : i32
    return %c0_i32, %arg0 : i32, i32
  }
}

</mosaic_0001>

<bundles_post_ra>
// kernel: planar_transform_forward.1
= control target key start
LH: loop header
LB: loop body
LE: loop exit
PB: predicated region body
PF: predicated region fallthrough
CT: control target
= control target key end

     0   :  { %s215_s0 = inlined_call_operand.vmem [shape: f32[6], index: 0, kind: input, shape index: {}]   ;;  %s216_s1 = inlined_call_operand.vmem [shape: f32[2,128], index: 1, kind: input, shape index: {}]   ;;  %s217_s2 = inlined_call_operand.hbm [shape: f32[2,128], index: 2, kind: output, shape index: {0}]   ;;  %s218_s3 = inlined_call_operand.hbm [shape: f32[1,128], index: 3, kind: output, shape index: {1}]  }
   0x1   :  { %s9_s14 = sshll.u32 %s215_s0, 4  ;;  %s10_s14 = int_to_ptr.vmem [resolvable:$true] %s9_s14 }
   0x2   :  { %s94_s15 = scalar_lea.vmem %s10_s14, 16  ;;  %p99_p1 = scmp.lt.s32.totalorder %s10_s14, %s10_s14 }
   0x3   :  { %p95_p0 = scmp.ne.s32.totalorder %s10_s14, %s94_s15  ;;  %p100_p2 = scmp.lt.s32.totalorder %s94_s15, %s94_s15 }
   0x5   :  { %p101_p3 = por %p100_p2, %p99_p1 }
   0x7   :  { %p102_p4 = pnand %p101_p3, %p95_p0 }
   0x9   :  { %105 = shalt.err (!%p102_p4)  }
   0xa   :  { %s156_s16 = smov [#allocation3]  }
   0xb   :  { %12 = dma.vmem_to_smem %s10_s14, 16, %s156_s16, [#allocation2] }
   0xc   :  { %150 = dma.done.wait [#allocation2], 16 }
   0xd   :  { %151 = vsyncadd [#allocation2], 4294967280 }
   0xe   :  { %14 = sfence }
   0xf   :  { %15 = vsyncpa [#allocation5], 0  ;;  %s19_s17 = sld [smem:[#allocation3]]  ;;  %s83_s18 = sld [smem:[#allocation3 + $0x2]] }
  0x10   :  { %s84_s19 = sld [smem:[#allocation3 + $0x3]] }
  0x11   :  { %16 = vsyncpa [#allocation7], 0  ;;  %v21_v0 = vld [vmem:[%s216_s1] sm:$0x1]  ;;  %v27_v1 = vld [vmem:[%s216_s1 + $0x1] sm:$0x1] }
  0x12   :  { %s85_s23 = sld [smem:[#allocation3 + $0x4]]  ;;  %s86_s24 = sld [smem:[#allocation3 + $0x5]]  ;;  %v38_v12 = vld [vmem:[%s216_s1 + $0x1] sm:$0x1] }
  0x13   :  { %s82_s25 = sld [smem:[#allocation3 + $0x1]]  ;;  %s157_s28 = smov [#allocation4]  }
  0x14   :  { %s60_s29 = sshll.u32 %s157_s28, 4  ;;  %s61_s29 = int_to_ptr.vmem [resolvable:$true] %s60_s29 }
  0x15   :  { %v23_v2 = vstv %s83_s18  ;;  %v25_v3 = vstv %s19_s17  ;;  %s106_s30 = scalar_lea.vmem %s61_s29, 32  ;;  %p111_p6 = scmp.lt.s32.totalorder %s61_s29, %s61_s29 }
  0x16   :  { %v24_v4 = vmul.f32 %v23_v2, %v21_v0  ;;  %v29_v5 = vstv %s84_s19  ;;  %p107_p5 = scmp.ne.s32.totalorder %s61_s29, %s106_s30  ;;  %p112_p7 = scmp.lt.s32.totalorder %s106_s30, %s106_s30 }
  0x17   :  { %v30_v6 = vmul.f32 %v29_v5, %v27_v1 }
  0x18   :  { %v26_v7 = vadd.f32 %v25_v3, %v24_v4  ;;  %v34_v9 = vstv %s85_s23  ;;  %v40_v10 = vstv %s86_s24  ;;  %p113_p8 = por %p112_p7, %p111_p6 }
  0x19   :  { %v46_v16 = vstv %s82_s25 }
  0x1a   :  { %v31_v8 = vadd.f32 %v30_v6, %v26_v7  ;;  %p114_p9 = pnand %p113_p8, %p107_p5 }
  0x1c   :  { %90 = vtanh.f32 %v31_v8 }
  0x26   :  { %v91_v11 = vpop.eup %90 }
  0x27   :  { %v35_v13 = vmul.f32 %v91_v11, %v34_v9  ;;  %v41_v14 = vmul.f32 %v91_v11, %v40_v10  ;;  %v44_v15 = vmul.f32 %v91_v11, %v91_v11 }
  0x29   :  { %v36_v17 = vadd.f32 %v35_v13, %v21_v0  ;;  %v42_v18 = vadd.f32 %v41_v14, %v38_v12  ;;  %v45_v19 = vsub.f32 1.0, %v44_v15 }
  0x2b   :  { %37 = vst [vmem:[#allocation4] sm:$0x1] %v36_v17  ;;  %43 = vst [vmem:[#allocation4 + $0x1] sm:$0x1] %v42_v18  ;;  %v47_v20 = vmul.f32 %v46_v16, %v45_v19 }
  0x2c   :  { %117 = shalt.err (!%p114_p9)
}
  0x2d   :  { %s118_s5 = scalar_lea.hbm %s217_s2, 32 }
  0x2e   :  { %p119_p10 = scmp.ne.s32.totalorder %s217_s2, %s118_s5  ;;  %p122_p11 = scmp.lt.u32.totalorder %s118_s5, %s217_s2 }
  0x30   :  { %p124_p12 = pnand %p122_p11, %p119_p10 }
  0x32   :  { %127 = shalt.err (!%p124_p12)
}
  0x33   :  { %63 = dma.vmem_to_hbm [thread:$0]  %s61_s29, 32, %s217_s2, [#allocation5]   ;;  %v48_v21 = vadd.f32 1.0, %v47_v20 }
  0x34   :  { %s158_s12 = smov [#allocation6]  }
  0x35   :  { %v49_v22 = vand.u32 2147483647, %v48_v21  ;;  %s70_s13 = sshll.u32 %s158_s12, 4  ;;  %s71_s13 = int_to_ptr.vmem [resolvable:$true] %s70_s13 }
  0x36   :  { %s128_s14 = scalar_lea.vmem %s71_s13, 16  ;;  %s132_s15 = scalar_lea.vmem %s71_s13, 32 }
  0x37   :  { %v50_v23 = vadd.f32 1e-06, %v49_v22  ;;  %p129_p13 = scmp.ne.s32.totalorder %s71_s13, %s128_s14  ;;  %p133_p0 = scmp.lt.s32.totalorder %s71_s13, %s71_s13 }
  0x38   :  { %p134_p1 = scmp.lt.s32.totalorder %s132_s15, %s128_s14 }
  0x39   :  { %92 = vlog2.f32 %v50_v23 }
  0x3a   :  { %p135_p2 = por %p134_p1, %p133_p0 }
  0x3c   :  { %p136_p3 = pnand %p135_p2, %p129_p13 }
  0x43   :  { %v93_v24 = vpop.eup %92 }
  0x44   :  { %v52_v25 = vmul.f32 0.6931472, %v93_v24 }
  0x46   :  { %53 = vst [vmem:[#allocation6] sm:$0x1] %v52_v25 }
  0x47   :  { %139 = shalt.err (!%p136_p3)
}
  0x48   :  { %s140_s17 = scalar_lea.hbm %s218_s3, 16 }
  0x49   :  { %p141_p4 = scmp.ne.s32.totalorder %s218_s3, %s140_s17  ;;  %p144_p5 = scmp.lt.u32.totalorder %s140_s17, %s218_s3 }
  0x4b   :  { %p146_p6 = pnand %p144_p5, %p141_p4 }
  0x4d   :  { %149 = shalt.err (!%p146_p6)
}
  0x4e   :  { %73 = dma.vmem_to_hbm [thread:$0]  %s71_s13, 16, %s218_s3, [#allocation7]  }
  0x4f   :  { %152 = dma.done.wait [#allocation5], 32  }
  0x50   :  { %153 = vsyncadd [#allocation5], 4294967264 }
  0x51   :  { %154 = dma.done.wait [#allocation7], 16  }
  0x52   :  { %155 = vsyncadd [#allocation7], 4294967280 }
  0x53   :  { %80 = vsyncpa [#allocation5], 1 }
  0x54   :  { %81 = vsyncpa [#allocation7], 1 }

</bundles_post_ra>
